<compile_context>
chip_gen: v6e
topology: v6e:2x2x1
jax: 0.10.0
libtpu: 0.0.40
codegen_flags: <defaults>
</compile_context>

<pallas_src>
import math

import jax
import jax.numpy as jnp
from jax.experimental import pallas as pl
from jax.experimental.pallas import tpu as pltpu

D_MODEL = 32
N_HEAD = 2
HEAD_DIM = D_MODEL // N_HEAD
D_FF = 2 * D_MODEL
N_CLASS = 173
N_CLASS_PAD = 256          # lane-dense classifier width (sliced back to 173)
LN_EPS = 1e-5
BN_EPS = 1e-5


# ---------------------------------------------------------------------------
# packed-parameter layout (128-lane aligned segments inside two slabs)
# ---------------------------------------------------------------------------
def _aligned_offsets(widths, align=128):
    offs, o = [], 0
    for w in widths:
        offs.append(o)
        o += ((w + align - 1) // align) * align
    return tuple(offs), o


# matrix slab: every entry has D_MODEL rows (w2 is stored transposed)
#   order: wqkv, wo, w1, w2^T, fc1_w, fc2_w(padded)
_W_WIDTHS = (3 * D_MODEL, D_MODEL, D_FF, D_FF, D_MODEL, N_CLASS_PAD)
_W_OFF, _W_TOTAL = _aligned_offsets(_W_WIDTHS)

# vector slab: order: bqkv, bo, b1, b2, ln1g, ln1b, ln2g, ln2b,
#                     fc1_b, bn_scale, bn_shift, fc2_b(padded)
_V_WIDTHS = (3 * D_MODEL, D_MODEL, D_FF, D_MODEL,
             D_MODEL, D_MODEL, D_MODEL, D_MODEL,
             D_MODEL, D_MODEL, D_MODEL, N_CLASS_PAD)
_V_OFF, _V_TOTAL = _aligned_offsets(_V_WIDTHS)


# ---------------------------------------------------------------------------
# in-kernel math helpers (trace-time inlined)
# ---------------------------------------------------------------------------
def _erf(x):
    # Abramowitz & Stegun 7.1.26 rational approximation (|err| < 1.5e-7).
    a1, a2, a3, a4, a5 = (0.254829592, -0.284496736, 1.421413741,
                          -1.453152027, 1.061405429)
    p = 0.3275911
    s = jnp.where(x >= 0.0, 1.0, -1.0)
    z = jnp.abs(x)
    t = 1.0 / (1.0 + p * z)
    poly = ((((a5 * t + a4) * t + a3) * t + a2) * t + a1) * t
    return s * (1.0 - poly * jnp.exp(-z * z))


def _gelu(x):
    # exact (erf-based) gelu, matching torch.nn.functional.gelu default
    return 0.5 * x * (1.0 + _erf(x * (1.0 / math.sqrt(2.0))))


def _layer_norm(x, g, b):
    mu = jnp.mean(x, axis=-1, keepdims=True)
    var = jnp.mean((x - mu) ** 2, axis=-1, keepdims=True)
    return (x - mu) * jax.lax.rsqrt(var + LN_EPS) * g + b


# ---------------------------------------------------------------------------
# Pallas kernel: whole batch in one invocation
# ---------------------------------------------------------------------------
def transformer_kernel(ids_ref, emb_ref, pe_ref, wslab_ref, vslab_ref, out_ref):
    BS = ids_ref.shape[0]           # TB * S  (flattened token rows)
    TB = pe_ref.shape[0]            # batch rows in this block
    S = BS // TB
    VP = emb_ref.shape[0]           # padded vocab

    # carve parameter segments straight out of the slab refs (static slices)
    def wseg(i):
        off = _W_OFF[i]
        return wslab_ref[:, off:off + _W_WIDTHS[i]]

    def vseg(i):
        off = _V_OFF[i]
        return vslab_ref[:, off:off + _V_WIDTHS[i]]

    wqkv, wo, w1, w2t, fc1w, fc2w = (wseg(i) for i in range(6))
    (bqkv, bo, b1, b2, ln1g, ln1b, ln2g, ln2b,
     fc1b, bn_s, bn_b, fc2b) = (vseg(i) for i in range(12))

    # --- fused embedding gather: one-hot(ids) @ emb (exact) ------------------
    ids = ids_ref[...]                                          # (BS, 1) int32
    vocab_iota = jax.lax.broadcasted_iota(jnp.int32, (BS, VP), 1)
    onehot = (vocab_iota == ids).astype(jnp.float32)            # (BS, VP)
    x = jnp.dot(onehot, emb_ref[...],
                preferred_element_type=jnp.float32)             # (BS, D)

    # --- positional encoding: pe row selected by *batch* index (reference bug)
    x = (x.reshape(TB, S, D_MODEL)
         + pe_ref[...][:, None, :]).reshape(BS, D_MODEL)

    # --- self attention (post-norm encoder layer), batched over batch rows ---
    qkv = jnp.dot(x, wqkv, preferred_element_type=jnp.float32) + bqkv  # (BS,3D)
    scale = 1.0 / math.sqrt(HEAD_DIM)
    heads = []
    for h in range(N_HEAD):
        lo = h * HEAD_DIM
        q = qkv[:, lo:lo + HEAD_DIM].reshape(TB, S, HEAD_DIM)
        k = qkv[:, D_MODEL + lo:D_MODEL + lo + HEAD_DIM].reshape(TB, S, HEAD_DIM)
        v = qkv[:, 2 * D_MODEL + lo:2 * D_MODEL + lo + HEAD_DIM].reshape(
            TB, S, HEAD_DIM)
        s = jnp.einsum("bqd,bkd->bqk", q, k,
                       preferred_element_type=jnp.float32) * scale     # (TB,S,S)
        m = jnp.max(s, axis=-1, keepdims=True)
        e = jnp.exp(s - m)
        p = e * pl.reciprocal(jnp.sum(e, axis=-1, keepdims=True), approx=True)
        o = jnp.einsum("bqk,bkd->bqd", p, v,
                       preferred_element_type=jnp.float32)             # (TB,S,hd)
        heads.append(o.reshape(BS, HEAD_DIM))
    attn = jnp.concatenate(heads, axis=-1)                             # (BS, D)
    attn = jnp.dot(attn, wo, preferred_element_type=jnp.float32) + bo
    x = _layer_norm(x + attn, ln1g, ln1b)

    # --- feed forward ---------------------------------------------------------
    ff = _gelu(jnp.dot(x, w1, preferred_element_type=jnp.float32) + b1)
    ff = jnp.einsum("nk,mk->nm", ff, w2t,                  # ff @ w2, w2 stored ^T
                    preferred_element_type=jnp.float32) + b2
    x = _layer_norm(x + ff, ln2g, ln2b)

    # --- mean pool over the sequence, then batched classifier head -----------
    pooled = jnp.mean(x.reshape(TB, S, D_MODEL), axis=1)               # (TB, D)
    y = jnp.dot(pooled, fc1w, preferred_element_type=jnp.float32) + fc1b
    y = _gelu(y * bn_s + bn_b)                     # eval-mode BatchNorm1d + gelu
    y = jnp.dot(y, fc2w, preferred_element_type=jnp.float32) + fc2b    # (TB,256)
    out_ref[...] = y


# ---------------------------------------------------------------------------
# parameter packing (done once, outside the hot path)
# ---------------------------------------------------------------------------
def pack_params(params):
    emb = params["emb"]
    vocab = emb.shape[0]
    vp = ((vocab + 7) // 8) * 8
    emb_pad = jnp.zeros((vp, D_MODEL), jnp.float32).at[:vocab].set(emb)

    fc2w_pad = jnp.zeros((D_MODEL, N_CLASS_PAD),
                         jnp.float32).at[:, :N_CLASS].set(params["fc2_w"])
    fc2b_pad = jnp.zeros((1, N_CLASS_PAD),
                         jnp.float32).at[:, :N_CLASS].set(params["fc2_b"])

    w_entries = (params["wqkv"], params["wo"], params["w1"],
                 params["w2"].T, params["fc1_w"], fc2w_pad)
    wslab = jnp.zeros((D_MODEL, _W_TOTAL), jnp.float32)
    for i, w in enumerate(w_entries):
        wslab = wslab.at[:, _W_OFF[i]:_W_OFF[i] + w.shape[1]].set(w)

    v_entries = (params["bqkv"], params["bo"], params["b1"], params["b2"],
                 params["ln1_g"], params["ln1_b"],
                 params["ln2_g"], params["ln2_b"],
                 params["fc1_b"], params["bn_scale"], params["bn_shift"],
                 fc2b_pad)
    vslab = jnp.zeros((1, _V_TOTAL), jnp.float32)
    for i, v in enumerate(v_entries):
        vslab = vslab.at[:, _V_OFF[i]:_V_OFF[i] + v.shape[1]].set(v)

    return {"emb_pad": emb_pad, "pe_full": params["pe_full"],
            "wslab": wslab, "vslab": vslab}


# ---------------------------------------------------------------------------
# wrapper
# ---------------------------------------------------------------------------
def transformer_forward(token_ids, packed):
    B, S = token_ids.shape
    ids2d = token_ids.reshape(B * S, 1).astype(jnp.int32)
    pe_rows = packed["pe_full"][:B]                 # (B, D): pe-by-batch bug
    emb_pad = packed["emb_pad"]
    wslab = packed["wslab"]
    vslab = packed["vslab"]

    out = pl.pallas_call(
        transformer_kernel,
        out_shape=jax.ShapeDtypeStruct((B, N_CLASS_PAD), jnp.float32),
        grid=(1,),
        in_specs=[
            pl.BlockSpec((B * S, 1), lambda i: (0, 0)),
            pl.BlockSpec(emb_pad.shape, lambda i: (0, 0)),
            pl.BlockSpec((B, D_MODEL), lambda i: (0, 0)),
            pl.BlockSpec(wslab.shape, lambda i: (0, 0)),
            pl.BlockSpec(vslab.shape, lambda i: (0, 0)),
        ],
        out_specs=pl.BlockSpec((B, N_CLASS_PAD), lambda i: (0, 0)),
        compiler_params=pltpu.CompilerParams(
            dimension_semantics=("arbitrary",)),
    )(ids2d, emb_pad, pe_rows, wslab, vslab)
    return out[:, :N_CLASS]


# ---------------------------------------------------------------------------
# deterministic synthetic parameters (shapes from the PyTorch __init__)
# ---------------------------------------------------------------------------
def init_params(key, vocab_size, n_class=N_CLASS, max_len=64):
    ks = jax.random.split(key, 10)

    def kaiming(k, shape, fan_in):
        return (jax.random.normal(k, shape, jnp.float32)
                * jnp.sqrt(2.0 / fan_in))

    position = jnp.arange(max_len, dtype=jnp.float32)[:, None]
    div_term = jnp.exp(jnp.arange(0, D_MODEL, 2, dtype=jnp.float32)
                       * (-math.log(10000.0) / D_MODEL))
    pe = jnp.zeros((max_len, D_MODEL), jnp.float32)
    pe = pe.at[:, 0::2].set(jnp.sin(position * div_term))
    pe = pe.at[:, 1::2].set(jnp.cos(position * div_term))

    params = {
        "emb": kaiming(ks[0], (vocab_size, D_MODEL), D_MODEL),
        "pe_full": pe,
        # attention: weights stored pre-transposed so y = x @ W + b
        "wqkv": jax.random.normal(ks[1], (D_MODEL, 3 * D_MODEL), jnp.float32)
                / math.sqrt(D_MODEL),
        "bqkv": jnp.zeros((1, 3 * D_MODEL), jnp.float32),
        "wo": kaiming(ks[2], (D_MODEL, D_MODEL), D_MODEL),
        "bo": jnp.zeros((1, D_MODEL), jnp.float32),
        "ln1_g": jnp.ones((1, D_MODEL), jnp.float32),
        "ln1_b": jnp.zeros((1, D_MODEL), jnp.float32),
        # FFN
        "w1": kaiming(ks[3], (D_MODEL, D_FF), D_MODEL),
        "b1": jnp.zeros((1, D_FF), jnp.float32),
        "w2": kaiming(ks[4], (D_FF, D_MODEL), D_FF),
        "b2": jnp.zeros((1, D_MODEL), jnp.float32),
        "ln2_g": jnp.ones((1, D_MODEL), jnp.float32),
        "ln2_b": jnp.zeros((1, D_MODEL), jnp.float32),
        # head
        "fc1_w": kaiming(ks[5], (D_MODEL, D_MODEL), D_MODEL),
        "fc1_b": jnp.zeros((1, D_MODEL), jnp.float32),
        # eval-mode BatchNorm1d (running_mean=0, running_var=1, g=1, b=0)
        "bn_scale": jnp.full((1, D_MODEL), 1.0 / math.sqrt(1.0 + BN_EPS),
                             jnp.float32),
        "bn_shift": jnp.zeros((1, D_MODEL), jnp.float32),
        "fc2_w": kaiming(ks[6], (D_MODEL, n_class), D_MODEL),
        "fc2_b": jnp.zeros((1, n_class), jnp.float32),
    }
    return params


# ---------------------------------------------------------------------------
# pure-JAX reference for a correctness check
# ---------------------------------------------------------------------------
def reference_forward(token_ids, params):
    B, S = token_ids.shape
    x = jnp.take(params["emb"], token_ids, axis=0)
    x = x + params["pe_full"][:B][:, None, :]

    qkv = x @ params["wqkv"] + params["bqkv"][0]
    q, k, v = jnp.split(qkv, 3, axis=-1)

    def split_heads(t):
        return t.reshape(B, S, N_HEAD, HEAD_DIM).transpose(0, 2, 1, 3)

    qh, kh, vh = split_heads(q), split_heads(k), split_heads(v)
    scores = jnp.einsum("bhqd,bhkd->bhqk", qh, kh) / math.sqrt(HEAD_DIM)
    probs = jax.nn.softmax(scores, axis=-1)
    attn = jnp.einsum("bhqk,bhkd->bhqd", probs, vh)
    attn = attn.transpose(0, 2, 1, 3).reshape(B, S, D_MODEL)
    attn = attn @ params["wo"] + params["bo"][0]

    def ln(t, g, b):
        mu = t.mean(-1, keepdims=True)
        var = ((t - mu) ** 2).mean(-1, keepdims=True)
        return (t - mu) / jnp.sqrt(var + LN_EPS) * g[0] + b[0]

    x = ln(x + attn, params["ln1_g"], params["ln1_b"])
    ff = jax.nn.gelu(x @ params["w1"] + params["b1"][0], approximate=False)
    ff = ff @ params["w2"] + params["b2"][0]
    x = ln(x + ff, params["ln2_g"], params["ln2_b"])

    pooled = x.mean(axis=1)
    y = pooled @ params["fc1_w"] + params["fc1_b"][0]
    y = y * params["bn_scale"][0] + params["bn_shift"][0]
    y = jax.nn.gelu(y, approximate=False)
    return y @ params["fc2_w"] + params["fc2_b"][0]


if __name__ == "__main__":
    B, S, VOCAB = 2, 8, 50
    key = jax.random.PRNGKey(0)
    k_ids, k_params = jax.random.split(key)
    token_ids = jax.random.randint(k_ids, (B, S), 0, VOCAB, dtype=jnp.int32)
    params = init_params(k_params, VOCAB)
    packed = pack_params(params)

    out = transformer_forward(token_ids, packed)
    out = jax.block_until_ready(out)

    ref = reference_forward(token_ids, params)
    assert out.shape == (B, N_CLASS), out.shape
    # tolerance slightly looser than 1e-3 because the softmax denominator uses
    # the EUP approximate reciprocal (~2^-12 relative error).
    assert jnp.allclose(out, ref, atol=2e-3, rtol=2e-3), \
        float(jnp.max(jnp.abs(out - ref)))
    print("KERNEL_OK")
</pallas_src>

<mosaic_0001>
module attributes {stable_mosaic.version = 11 : i64} {
  func.func @transformer_kernel(%arg0: i32, %arg1: memref<16x1xi32, #tpu.memory_space<vmem>>, %arg2: memref<56x32xf32, #tpu.memory_space<vmem>>, %arg3: memref<2x32xf32, #tpu.memory_space<vmem>>, %arg4: memref<32x896xf32, #tpu.memory_space<vmem>>, %arg5: memref<1x1664xf32, #tpu.memory_space<vmem>>, %arg6: memref<2x256xf32, #tpu.memory_space<vmem>>) attributes {dimension_semantics = [#tpu.dimension_semantics<arbitrary>], iteration_bounds = array<i64: 1>, scalar_prefetch = 0 : i64, scratch_operands = 0 : i64, tpu.core_type = #tpu.core_type<tc>, window_params = [{pipeline_mode = #tpu.pipeline_mode<synchronous>, transform_indices = @transform_0, window_bounds = array<i64: 16, 1>}, {pipeline_mode = #tpu.pipeline_mode<synchronous>, transform_indices = @transform_1, window_bounds = array<i64: 56, 32>}, {pipeline_mode = #tpu.pipeline_mode<synchronous>, transform_indices = @transform_2, window_bounds = array<i64: 2, 32>}, {pipeline_mode = #tpu.pipeline_mode<synchronous>, transform_indices = @transform_3, window_bounds = array<i64: 32, 896>}, {pipeline_mode = #tpu.pipeline_mode<synchronous>, transform_indices = @transform_4, window_bounds = array<i64: 1, 1664>}, {pipeline_mode = #tpu.pipeline_mode<synchronous>, transform_indices = @transform_5, window_bounds = array<i64: 2, 256>}]} {
    %c0 = arith.constant 0 : index
    %c0_0 = arith.constant 0 : index
    %0 = vector.load %arg4[%c0, %c0_0] : memref<32x896xf32, #tpu.memory_space<vmem>>, vector<32x96xf32>
    %c0_1 = arith.constant 0 : index
    %c128 = arith.constant 128 : index
    %1 = vector.load %arg4[%c0_1, %c128] : memref<32x896xf32, #tpu.memory_space<vmem>>, vector<32x32xf32>
    %c0_2 = arith.constant 0 : index
    %c256 = arith.constant 256 : index
    %2 = vector.load %arg4[%c0_2, %c256] : memref<32x896xf32, #tpu.memory_space<vmem>>, vector<32x64xf32>
    %c0_3 = arith.constant 0 : index
    %c384 = arith.constant 384 : index
    %3 = vector.load %arg4[%c0_3, %c384] : memref<32x896xf32, #tpu.memory_space<vmem>>, vector<32x64xf32>
    %c0_4 = arith.constant 0 : index
    %c512 = arith.constant 512 : index
    %4 = vector.load %arg4[%c0_4, %c512] : memref<32x896xf32, #tpu.memory_space<vmem>>, vector<32x32xf32>
    %c0_5 = arith.constant 0 : index
    %c640 = arith.constant 640 : index
    %5 = vector.load %arg4[%c0_5, %c640] : memref<32x896xf32, #tpu.memory_space<vmem>>, vector<32x256xf32>
    %c0_6 = arith.constant 0 : index
    %c0_7 = arith.constant 0 : index
    %6 = vector.load %arg5[%c0_6, %c0_7] : memref<1x1664xf32, #tpu.memory_space<vmem>>, vector<1x96xf32>
    %c0_8 = arith.constant 0 : index
    %c128_9 = arith.constant 128 : index
    %7 = vector.load %arg5[%c0_8, %c128_9] : memref<1x1664xf32, #tpu.memory_space<vmem>>, vector<1x32xf32>
    %c0_10 = arith.constant 0 : index
    %c256_11 = arith.constant 256 : index
    %8 = vector.load %arg5[%c0_10, %c256_11] : memref<1x1664xf32, #tpu.memory_space<vmem>>, vector<1x64xf32>
    %c0_12 = arith.constant 0 : index
    %c384_13 = arith.constant 384 : index
    %9 = vector.load %arg5[%c0_12, %c384_13] : memref<1x1664xf32, #tpu.memory_space<vmem>>, vector<1x32xf32>
    %c0_14 = arith.constant 0 : index
    %c512_15 = arith.constant 512 : index
    %10 = vector.load %arg5[%c0_14, %c512_15] : memref<1x1664xf32, #tpu.memory_space<vmem>>, vector<1x32xf32>
    %c0_16 = arith.constant 0 : index
    %c640_17 = arith.constant 640 : index
    %11 = vector.load %arg5[%c0_16, %c640_17] : memref<1x1664xf32, #tpu.memory_space<vmem>>, vector<1x32xf32>
    %c0_18 = arith.constant 0 : index
    %c768 = arith.constant 768 : index
    %12 = vector.load %arg5[%c0_18, %c768] : memref<1x1664xf32, #tpu.memory_space<vmem>>, vector<1x32xf32>
    %c0_19 = arith.constant 0 : index
    %c896 = arith.constant 896 : index
    %13 = vector.load %arg5[%c0_19, %c896] : memref<1x1664xf32, #tpu.memory_space<vmem>>, vector<1x32xf32>
    %c0_20 = arith.constant 0 : index
    %c1024 = arith.constant 1024 : index
    %14 = vector.load %arg5[%c0_20, %c1024] : memref<1x1664xf32, #tpu.memory_space<vmem>>, vector<1x32xf32>
    %c0_21 = arith.constant 0 : index
    %c1152 = arith.constant 1152 : index
    %15 = vector.load %arg5[%c0_21, %c1152] : memref<1x1664xf32, #tpu.memory_space<vmem>>, vector<1x32xf32>
    %c0_22 = arith.constant 0 : index
    %c1280 = arith.constant 1280 : index
    %16 = vector.load %arg5[%c0_22, %c1280] : memref<1x1664xf32, #tpu.memory_space<vmem>>, vector<1x32xf32>
    %c0_23 = arith.constant 0 : index
    %c1408 = arith.constant 1408 : index
    %17 = vector.load %arg5[%c0_23, %c1408] : memref<1x1664xf32, #tpu.memory_space<vmem>>, vector<1x256xf32>
    %c0_24 = arith.constant 0 : index
    %c0_25 = arith.constant 0 : index
    %18 = vector.load %arg1[%c0_24, %c0_25] : memref<16x1xi32, #tpu.memory_space<vmem>>, vector<16x1xi32>
    %19 = tpu.iota {dimensions = array<i32: 1>} : vector<16x56xi32>
    %20 = vector.broadcast %18 : vector<16x1xi32> to vector<16x56xi32>
    %21 = arith.cmpi eq, %19, %20 : vector<16x56xi32>
    %22 = arith.extui %21 : vector<16x56xi1> to vector<16x56xi32>
    %23 = arith.sitofp %22 : vector<16x56xi32> to vector<16x56xf32>
    %c0_26 = arith.constant 0 : index
    %c0_27 = arith.constant 0 : index
    %24 = vector.load %arg2[%c0_26, %c0_27] : memref<56x32xf32, #tpu.memory_space<vmem>>, vector<56x32xf32>
    %cst = arith.constant dense<0.000000e+00> : vector<16x32xf32>
    %25 = tpu.matmul %23, %24, %cst {dimension_numbers = #tpu.dot_dimension_numbers<[1], [0], [0], [1], [0, 0, 1, 1], [], []>} : vector<16x56xf32>, vector<56x32xf32>, vector<16x32xf32> -> vector<16x32xf32>
    %26 = vector.shape_cast %25 : vector<16x32xf32> to vector<2x8x32xf32>
    %c0_28 = arith.constant 0 : index
    %c0_29 = arith.constant 0 : index
    %27 = vector.load %arg3[%c0_28, %c0_29] : memref<2x32xf32, #tpu.memory_space<vmem>>, vector<2x32xf32>
    %28 = vector.shape_cast %27 : vector<2x32xf32> to vector<2x1x32xf32>
    %29 = vector.broadcast %28 : vector<2x1x32xf32> to vector<2x8x32xf32>
    %30 = arith.addf %26, %29 : vector<2x8x32xf32>
    %31 = vector.shape_cast %30 : vector<2x8x32xf32> to vector<16x32xf32>
    %cst_30 = arith.constant dense<0.000000e+00> : vector<16x96xf32>
    %32 = tpu.matmul %31, %0, %cst_30 {dimension_numbers = #tpu.dot_dimension_numbers<[1], [0], [0], [1], [0, 0, 1, 1], [], []>} : vector<16x32xf32>, vector<32x96xf32>, vector<16x96xf32> -> vector<16x96xf32>
    %33 = vector.broadcast %6 : vector<1x96xf32> to vector<16x96xf32>
    %34 = arith.addf %32, %33 : vector<16x96xf32>
    %35 = vector.extract_strided_slice %34 {offsets = [0, 0], sizes = [16, 16], strides = [1, 1]} : vector<16x96xf32> to vector<16x16xf32>
    %36 = vector.shape_cast %35 : vector<16x16xf32> to vector<2x8x16xf32>
    %37 = vector.extract_strided_slice %34 {offsets = [0, 32], sizes = [16, 16], strides = [1, 1]} : vector<16x96xf32> to vector<16x16xf32>
    %38 = vector.shape_cast %37 : vector<16x16xf32> to vector<2x8x16xf32>
    %39 = vector.extract_strided_slice %34 {offsets = [0, 64], sizes = [16, 16], strides = [1, 1]} : vector<16x96xf32> to vector<16x16xf32>
    %40 = vector.shape_cast %39 : vector<16x16xf32> to vector<2x8x16xf32>
    "tpu.trace_start"() <{level = 10 : i32, message = "bqd,bkd->bqk"}> : () -> ()
    %cst_31 = arith.constant dense<0.000000e+00> : vector<2x8x8xf32>
    %41 = tpu.matmul %36, %38, %cst_31 {dimension_numbers = #tpu.dot_dimension_numbers<[2], [2], [1], [1], [0, 0, 0, 1, 1, 1], [0], [0]>} : vector<2x8x16xf32>, vector<2x8x16xf32>, vector<2x8x8xf32> -> vector<2x8x8xf32>
    "tpu.trace_stop"() : () -> ()
    %cst_32 = arith.constant 2.500000e-01 : f32
    %42 = vector.broadcast %cst_32 : f32 to vector<2x8x8xf32>
    %43 = arith.mulf %41, %42 : vector<2x8x8xf32>
    %cst_33 = arith.constant dense<0xFF800000> : vector<2x8xf32>
    %44 = vector.multi_reduction <maximumf>, %43, %cst_33 [2] : vector<2x8x8xf32> to vector<2x8xf32>
    %45 = vector.shape_cast %44 : vector<2x8xf32> to vector<2x8x1xf32>
    %46 = vector.broadcast %45 : vector<2x8x1xf32> to vector<2x8x8xf32>
    %47 = arith.subf %43, %46 : vector<2x8x8xf32>
    %48 = math.exp %47 : vector<2x8x8xf32>
    %cst_34 = arith.constant dense<0.000000e+00> : vector<2x8xf32>
    %49 = vector.multi_reduction <add>, %48, %cst_34 [2] : vector<2x8x8xf32> to vector<2x8xf32>
    %50 = vector.shape_cast %49 : vector<2x8xf32> to vector<2x8x1xf32>
    %51 = tpu.reciprocal %50 {approx = true} : vector<2x8x1xf32> -> vector<2x8x1xf32>
    %52 = vector.broadcast %51 : vector<2x8x1xf32> to vector<2x8x8xf32>
    %53 = arith.mulf %48, %52 : vector<2x8x8xf32>
    "tpu.trace_start"() <{level = 10 : i32, message = "bqk,bkd->bqd"}> : () -> ()
    %cst_35 = arith.constant dense<0.000000e+00> : vector<2x8x16xf32>
    %54 = tpu.matmul %53, %40, %cst_35 {dimension_numbers = #tpu.dot_dimension_numbers<[2], [1], [1], [2], [0, 0, 0, 1, 1, 2], [0], [0]>} : vector<2x8x8xf32>, vector<2x8x16xf32>, vector<2x8x16xf32> -> vector<2x8x16xf32>
    "tpu.trace_stop"() : () -> ()
    %55 = vector.shape_cast %54 : vector<2x8x16xf32> to vector<16x16xf32>
    %56 = vector.extract_strided_slice %34 {offsets = [0, 16], sizes = [16, 16], strides = [1, 1]} : vector<16x96xf32> to vector<16x16xf32>
    %57 = vector.shape_cast %56 : vector<16x16xf32> to vector<2x8x16xf32>
    %58 = vector.extract_strided_slice %34 {offsets = [0, 48], sizes = [16, 16], strides = [1, 1]} : vector<16x96xf32> to vector<16x16xf32>
    %59 = vector.shape_cast %58 : vector<16x16xf32> to vector<2x8x16xf32>
    %60 = vector.extract_strided_slice %34 {offsets = [0, 80], sizes = [16, 16], strides = [1, 1]} : vector<16x96xf32> to vector<16x16xf32>
    %61 = vector.shape_cast %60 : vector<16x16xf32> to vector<2x8x16xf32>
    "tpu.trace_start"() <{level = 10 : i32, message = "bqd,bkd->bqk"}> : () -> ()
    %cst_36 = arith.constant dense<0.000000e+00> : vector<2x8x8xf32>
    %62 = tpu.matmul %57, %59, %cst_36 {dimension_numbers = #tpu.dot_dimension_numbers<[2], [2], [1], [1], [0, 0, 0, 1, 1, 1], [0], [0]>} : vector<2x8x16xf32>, vector<2x8x16xf32>, vector<2x8x8xf32> -> vector<2x8x8xf32>
    "tpu.trace_stop"() : () -> ()
    %cst_37 = arith.constant 2.500000e-01 : f32
    %63 = vector.broadcast %cst_37 : f32 to vector<2x8x8xf32>
    %64 = arith.mulf %62, %63 : vector<2x8x8xf32>
    %cst_38 = arith.constant dense<0xFF800000> : vector<2x8xf32>
    %65 = vector.multi_reduction <maximumf>, %64, %cst_38 [2] : vector<2x8x8xf32> to vector<2x8xf32>
    %66 = vector.shape_cast %65 : vector<2x8xf32> to vector<2x8x1xf32>
    %67 = vector.broadcast %66 : vector<2x8x1xf32> to vector<2x8x8xf32>
    %68 = arith.subf %64, %67 : vector<2x8x8xf32>
    %69 = math.exp %68 : vector<2x8x8xf32>
    %cst_39 = arith.constant dense<0.000000e+00> : vector<2x8xf32>
    %70 = vector.multi_reduction <add>, %69, %cst_39 [2] : vector<2x8x8xf32> to vector<2x8xf32>
    %71 = vector.shape_cast %70 : vector<2x8xf32> to vector<2x8x1xf32>
    %72 = tpu.reciprocal %71 {approx = true} : vector<2x8x1xf32> -> vector<2x8x1xf32>
    %73 = vector.broadcast %72 : vector<2x8x1xf32> to vector<2x8x8xf32>
    %74 = arith.mulf %69, %73 : vector<2x8x8xf32>
    "tpu.trace_start"() <{level = 10 : i32, message = "bqk,bkd->bqd"}> : () -> ()
    %cst_40 = arith.constant dense<0.000000e+00> : vector<2x8x16xf32>
    %75 = tpu.matmul %74, %61, %cst_40 {dimension_numbers = #tpu.dot_dimension_numbers<[2], [1], [1], [2], [0, 0, 0, 1, 1, 2], [0], [0]>} : vector<2x8x8xf32>, vector<2x8x16xf32>, vector<2x8x16xf32> -> vector<2x8x16xf32>
    "tpu.trace_stop"() : () -> ()
    %76 = vector.shape_cast %75 : vector<2x8x16xf32> to vector<16x16xf32>
    %77 = tpu.concatenate %55, %76 in 1 : vector<16x16xf32>, vector<16x16xf32> -> vector<16x32xf32>
    %cst_41 = arith.constant dense<0.000000e+00> : vector<16x32xf32>
    %78 = tpu.matmul %77, %1, %cst_41 {dimension_numbers = #tpu.dot_dimension_numbers<[1], [0], [0], [1], [0, 0, 1, 1], [], []>} : vector<16x32xf32>, vector<32x32xf32>, vector<16x32xf32> -> vector<16x32xf32>
    %79 = vector.broadcast %7 : vector<1x32xf32> to vector<16x32xf32>
    %80 = arith.addf %78, %79 : vector<16x32xf32>
    %81 = arith.addf %31, %80 : vector<16x32xf32>
    %cst_42 = arith.constant dense<0.000000e+00> : vector<16xf32>
    %82 = vector.multi_reduction <add>, %81, %cst_42 [1] : vector<16x32xf32> to vector<16xf32>
    %83 = vector.shape_cast %82 : vector<16xf32> to vector<16x1xf32>
    %cst_43 = arith.constant 3.200000e+01 : f32
    %84 = vector.broadcast %cst_43 : f32 to vector<16x1xf32>
    %85 = arith.divf %83, %84 : vector<16x1xf32>
    %86 = vector.broadcast %85 : vector<16x1xf32> to vector<16x32xf32>
    %87 = arith.subf %81, %86 : vector<16x32xf32>
    %88 = arith.mulf %87, %87 : vector<16x32xf32>
    %cst_44 = arith.constant dense<0.000000e+00> : vector<16xf32>
    %89 = vector.multi_reduction <add>, %88, %cst_44 [1] : vector<16x32xf32> to vector<16xf32>
    %90 = vector.shape_cast %89 : vector<16xf32> to vector<16x1xf32>
    %cst_45 = arith.constant 3.200000e+01 : f32
    %91 = vector.broadcast %cst_45 : f32 to vector<16x1xf32>
    %92 = arith.divf %90, %91 : vector<16x1xf32>
    %93 = vector.broadcast %85 : vector<16x1xf32> to vector<16x32xf32>
    %94 = arith.subf %81, %93 : vector<16x32xf32>
    %cst_46 = arith.constant 9.99999974E-6 : f32
    %95 = vector.broadcast %cst_46 : f32 to vector<16x1xf32>
    %96 = arith.addf %92, %95 : vector<16x1xf32>
    %97 = math.rsqrt %96 : vector<16x1xf32>
    %98 = vector.broadcast %97 : vector<16x1xf32> to vector<16x32xf32>
    %99 = arith.mulf %94, %98 : vector<16x32xf32>
    %100 = vector.broadcast %10 : vector<1x32xf32> to vector<16x32xf32>
    %101 = arith.mulf %99, %100 : vector<16x32xf32>
    %102 = vector.broadcast %11 : vector<1x32xf32> to vector<16x32xf32>
    %103 = arith.addf %101, %102 : vector<16x32xf32>
    %cst_47 = arith.constant dense<0.000000e+00> : vector<16x64xf32>
    %104 = tpu.matmul %103, %2, %cst_47 {dimension_numbers = #tpu.dot_dimension_numbers<[1], [0], [0], [1], [0, 0, 1, 1], [], []>} : vector<16x32xf32>, vector<32x64xf32>, vector<16x64xf32> -> vector<16x64xf32>
    %105 = vector.broadcast %8 : vector<1x64xf32> to vector<16x64xf32>
    %106 = arith.addf %104, %105 : vector<16x64xf32>
    %cst_48 = arith.constant 5.000000e-01 : f32
    %107 = vector.broadcast %cst_48 : f32 to vector<16x64xf32>
    %108 = arith.mulf %107, %106 : vector<16x64xf32>
    %cst_49 = arith.constant 0.707106769 : f32
    %109 = vector.broadcast %cst_49 : f32 to vector<16x64xf32>
    %110 = arith.mulf %106, %109 : vector<16x64xf32>
    %cst_50 = arith.constant 0.000000e+00 : f32
    %111 = vector.broadcast %cst_50 : f32 to vector<16x64xf32>
    %112 = arith.cmpf oge, %110, %111 : vector<16x64xf32>
    %cst_51 = arith.constant 1.000000e+00 : f32
    %cst_52 = arith.constant -1.000000e+00 : f32
    %113 = vector.broadcast %cst_51 : f32 to vector<16x64xf32>
    %114 = vector.broadcast %cst_52 : f32 to vector<16x64xf32>
    %115 = arith.select %112, %113, %114 : vector<16x64xi1>, vector<16x64xf32>
    %116 = math.absf %110 : vector<16x64xf32>
    %cst_53 = arith.constant 0.327591091 : f32
    %117 = vector.broadcast %cst_53 : f32 to vector<16x64xf32>
    %118 = arith.mulf %117, %116 : vector<16x64xf32>
    %cst_54 = arith.constant 1.000000e+00 : f32
    %119 = vector.broadcast %cst_54 : f32 to vector<16x64xf32>
    %120 = arith.addf %119, %118 : vector<16x64xf32>
    %cst_55 = arith.constant 1.000000e+00 : f32
    %121 = vector.broadcast %cst_55 : f32 to vector<16x64xf32>
    %122 = arith.divf %121, %120 : vector<16x64xf32>
    %cst_56 = arith.constant 1.06140542 : f32
    %123 = vector.broadcast %cst_56 : f32 to vector<16x64xf32>
    %124 = arith.mulf %123, %122 : vector<16x64xf32>
    %cst_57 = arith.constant -1.45315206 : f32
    %125 = vector.broadcast %cst_57 : f32 to vector<16x64xf32>
    %126 = arith.addf %124, %125 : vector<16x64xf32>
    %127 = arith.mulf %126, %122 : vector<16x64xf32>
    %cst_58 = arith.constant 1.42141378 : f32
    %128 = vector.broadcast %cst_58 : f32 to vector<16x64xf32>
    %129 = arith.addf %127, %128 : vector<16x64xf32>
    %130 = arith.mulf %129, %122 : vector<16x64xf32>
    %cst_59 = arith.constant -0.284496725 : f32
    %131 = vector.broadcast %cst_59 : f32 to vector<16x64xf32>
    %132 = arith.addf %130, %131 : vector<16x64xf32>
    %133 = arith.mulf %132, %122 : vector<16x64xf32>
    %cst_60 = arith.constant 0.254829586 : f32
    %134 = vector.broadcast %cst_60 : f32 to vector<16x64xf32>
    %135 = arith.addf %133, %134 : vector<16x64xf32>
    %136 = arith.mulf %135, %122 : vector<16x64xf32>
    %cst_61 = arith.constant 0.000000e+00 : f32
    %137 = vector.broadcast %cst_61 : f32 to vector<16x64xf32>
    %138 = arith.subf %137, %116 : vector<16x64xf32>
    %139 = arith.mulf %138, %116 : vector<16x64xf32>
    %140 = math.exp %139 : vector<16x64xf32>
    %141 = arith.mulf %136, %140 : vector<16x64xf32>
    %cst_62 = arith.constant 1.000000e+00 : f32
    %142 = vector.broadcast %cst_62 : f32 to vector<16x64xf32>
    %143 = arith.subf %142, %141 : vector<16x64xf32>
    %144 = arith.mulf %115, %143 : vector<16x64xf32>
    %cst_63 = arith.constant 1.000000e+00 : f32
    %145 = vector.broadcast %cst_63 : f32 to vector<16x64xf32>
    %146 = arith.addf %145, %144 : vector<16x64xf32>
    %147 = arith.mulf %108, %146 : vector<16x64xf32>
    "tpu.trace_start"() <{level = 10 : i32, message = "nk,mk->nm"}> : () -> ()
    %cst_64 = arith.constant dense<0.000000e+00> : vector<16x32xf32>
    %148 = tpu.matmul %147, %3, %cst_64 {dimension_numbers = #tpu.dot_dimension_numbers<[1], [1], [0], [0], [0, 0, 1, 0], [], []>} : vector<16x64xf32>, vector<32x64xf32>, vector<16x32xf32> -> vector<16x32xf32>
    "tpu.trace_stop"() : () -> ()
    %149 = vector.broadcast %9 : vector<1x32xf32> to vector<16x32xf32>
    %150 = arith.addf %148, %149 : vector<16x32xf32>
    %151 = arith.addf %103, %150 : vector<16x32xf32>
    %cst_65 = arith.constant dense<0.000000e+00> : vector<16xf32>
    %152 = vector.multi_reduction <add>, %151, %cst_65 [1] : vector<16x32xf32> to vector<16xf32>
    %153 = vector.shape_cast %152 : vector<16xf32> to vector<16x1xf32>
    %cst_66 = arith.constant 3.200000e+01 : f32
    %154 = vector.broadcast %cst_66 : f32 to vector<16x1xf32>
    %155 = arith.divf %153, %154 : vector<16x1xf32>
    %156 = vector.broadcast %155 : vector<16x1xf32> to vector<16x32xf32>
    %157 = arith.subf %151, %156 : vector<16x32xf32>
    %158 = arith.mulf %157, %157 : vector<16x32xf32>
    %cst_67 = arith.constant dense<0.000000e+00> : vector<16xf32>
    %159 = vector.multi_reduction <add>, %158, %cst_67 [1] : vector<16x32xf32> to vector<16xf32>
    %160 = vector.shape_cast %159 : vector<16xf32> to vector<16x1xf32>
    %cst_68 = arith.constant 3.200000e+01 : f32
    %161 = vector.broadcast %cst_68 : f32 to vector<16x1xf32>
    %162 = arith.divf %160, %161 : vector<16x1xf32>
    %163 = vector.broadcast %155 : vector<16x1xf32> to vector<16x32xf32>
    %164 = arith.subf %151, %163 : vector<16x32xf32>
    %cst_69 = arith.constant 9.99999974E-6 : f32
    %165 = vector.broadcast %cst_69 : f32 to vector<16x1xf32>
    %166 = arith.addf %162, %165 : vector<16x1xf32>
    %167 = math.rsqrt %166 : vector<16x1xf32>
    %168 = vector.broadcast %167 : vector<16x1xf32> to vector<16x32xf32>
    %169 = arith.mulf %164, %168 : vector<16x32xf32>
    %170 = vector.broadcast %12 : vector<1x32xf32> to vector<16x32xf32>
    %171 = arith.mulf %169, %170 : vector<16x32xf32>
    %172 = vector.broadcast %13 : vector<1x32xf32> to vector<16x32xf32>
    %173 = arith.addf %171, %172 : vector<16x32xf32>
    %174 = vector.shape_cast %173 : vector<16x32xf32> to vector<2x8x32xf32>
    %cst_70 = arith.constant dense<0.000000e+00> : vector<2x32xf32>
    %175 = vector.multi_reduction <add>, %174, %cst_70 [1] : vector<2x8x32xf32> to vector<2x32xf32>
    %cst_71 = arith.constant 8.000000e+00 : f32
    %176 = vector.broadcast %cst_71 : f32 to vector<2x32xf32>
    %177 = arith.divf %175, %176 : vector<2x32xf32>
    %cst_72 = arith.constant dense<0.000000e+00> : vector<2x32xf32>
    %178 = tpu.matmul %177, %4, %cst_72 {dimension_numbers = #tpu.dot_dimension_numbers<[1], [0], [0], [1], [0, 0, 1, 1], [], []>} : vector<2x32xf32>, vector<32x32xf32>, vector<2x32xf32> -> vector<2x32xf32>
    %179 = vector.broadcast %14 : vector<1x32xf32> to vector<2x32xf32>
    %180 = arith.addf %178, %179 : vector<2x32xf32>
    %181 = vector.broadcast %15 : vector<1x32xf32> to vector<2x32xf32>
    %182 = arith.mulf %180, %181 : vector<2x32xf32>
    %183 = vector.broadcast %16 : vector<1x32xf32> to vector<2x32xf32>
    %184 = arith.addf %182, %183 : vector<2x32xf32>
    %cst_73 = arith.constant 5.000000e-01 : f32
    %185 = vector.broadcast %cst_73 : f32 to vector<2x32xf32>
    %186 = arith.mulf %185, %184 : vector<2x32xf32>
    %cst_74 = arith.constant 0.707106769 : f32
    %187 = vector.broadcast %cst_74 : f32 to vector<2x32xf32>
    %188 = arith.mulf %184, %187 : vector<2x32xf32>
    %cst_75 = arith.constant 0.000000e+00 : f32
    %189 = vector.broadcast %cst_75 : f32 to vector<2x32xf32>
    %190 = arith.cmpf oge, %188, %189 : vector<2x32xf32>
    %cst_76 = arith.constant 1.000000e+00 : f32
    %cst_77 = arith.constant -1.000000e+00 : f32
    %191 = vector.broadcast %cst_76 : f32 to vector<2x32xf32>
    %192 = vector.broadcast %cst_77 : f32 to vector<2x32xf32>
    %193 = arith.select %190, %191, %192 : vector<2x32xi1>, vector<2x32xf32>
    %194 = math.absf %188 : vector<2x32xf32>
    %cst_78 = arith.constant 0.327591091 : f32
    %195 = vector.broadcast %cst_78 : f32 to vector<2x32xf32>
    %196 = arith.mulf %195, %194 : vector<2x32xf32>
    %cst_79 = arith.constant 1.000000e+00 : f32
    %197 = vector.broadcast %cst_79 : f32 to vector<2x32xf32>
    %198 = arith.addf %197, %196 : vector<2x32xf32>
    %cst_80 = arith.constant 1.000000e+00 : f32
    %199 = vector.broadcast %cst_80 : f32 to vector<2x32xf32>
    %200 = arith.divf %199, %198 : vector<2x32xf32>
    %cst_81 = arith.constant 1.06140542 : f32
    %201 = vector.broadcast %cst_81 : f32 to vector<2x32xf32>
    %202 = arith.mulf %201, %200 : vector<2x32xf32>
    %cst_82 = arith.constant -1.45315206 : f32
    %203 = vector.broadcast %cst_82 : f32 to vector<2x32xf32>
    %204 = arith.addf %202, %203 : vector<2x32xf32>
    %205 = arith.mulf %204, %200 : vector<2x32xf32>
    %cst_83 = arith.constant 1.42141378 : f32
    %206 = vector.broadcast %cst_83 : f32 to vector<2x32xf32>
    %207 = arith.addf %205, %206 : vector<2x32xf32>
    %208 = arith.mulf %207, %200 : vector<2x32xf32>
    %cst_84 = arith.constant -0.284496725 : f32
    %209 = vector.broadcast %cst_84 : f32 to vector<2x32xf32>
    %210 = arith.addf %208, %209 : vector<2x32xf32>
    %211 = arith.mulf %210, %200 : vector<2x32xf32>
    %cst_85 = arith.constant 0.254829586 : f32
    %212 = vector.broadcast %cst_85 : f32 to vector<2x32xf32>
    %213 = arith.addf %211, %212 : vector<2x32xf32>
    %214 = arith.mulf %213, %200 : vector<2x32xf32>
    %cst_86 = arith.constant 0.000000e+00 : f32
    %215 = vector.broadcast %cst_86 : f32 to vector<2x32xf32>
    %216 = arith.subf %215, %194 : vector<2x32xf32>
    %217 = arith.mulf %216, %194 : vector<2x32xf32>
    %218 = math.exp %217 : vector<2x32xf32>
    %219 = arith.mulf %214, %218 : vector<2x32xf32>
    %cst_87 = arith.constant 1.000000e+00 : f32
    %220 = vector.broadcast %cst_87 : f32 to vector<2x32xf32>
    %221 = arith.subf %220, %219 : vector<2x32xf32>
    %222 = arith.mulf %193, %221 : vector<2x32xf32>
    %cst_88 = arith.constant 1.000000e+00 : f32
    %223 = vector.broadcast %cst_88 : f32 to vector<2x32xf32>
    %224 = arith.addf %223, %222 : vector<2x32xf32>
    %225 = arith.mulf %186, %224 : vector<2x32xf32>
    %cst_89 = arith.constant dense<0.000000e+00> : vector<2x256xf32>
    %226 = tpu.matmul %225, %5, %cst_89 {dimension_numbers = #tpu.dot_dimension_numbers<[1], [0], [0], [1], [0, 0, 1, 1], [], []>} : vector<2x32xf32>, vector<32x256xf32>, vector<2x256xf32> -> vector<2x256xf32>
    %227 = vector.broadcast %17 : vector<1x256xf32> to vector<2x256xf32>
    %228 = arith.addf %226, %227 : vector<2x256xf32>
    %c0_90 = arith.constant 0 : index
    %c0_91 = arith.constant 0 : index
    %229 = vector.load %arg6[%c0_90, %c0_91] : memref<2x256xf32, #tpu.memory_space<vmem>>, vector<2x256xf32>
    tpu.vector_store %arg6[%c0_90, %c0_91], %228 {strides = array<i32>} : memref<2x256xf32, #tpu.memory_space<vmem>>, vector<2x256xf32>,
    return
  }
  func.func @transform_0(%arg0: i32) -> (i32, i32) {
    %c0_i32 = arith.constant 0 : i32
    %c0_i32_0 = arith.constant 0 : i32
    %c0_i32_1 = arith.constant 0 : i32
    return %c0_i32, %c0_i32_0 : i32, i32
  }
  func.func @transform_1(%arg0: i32) -> (i32, i32) {
    %c0_i32 = arith.constant 0 : i32
    %c0_i32_0 = arith.constant 0 : i32
    %c0_i32_1 = arith.constant 0 : i32
    return %c0_i32, %c0_i32_0 : i32, i32
  }
  func.func @transform_2(%arg0: i32) -> (i32, i32) {
    %c0_i32 = arith.constant 0 : i32
    %c0_i32_0 = arith.constant 0 : i32
    %c0_i32_1 = arith.constant 0 : i32
    return %c0_i32, %c0_i32_0 : i32, i32
  }
  func.func @transform_3(%arg0: i32) -> (i32, i32) {
    %c0_i32 = arith.constant 0 : i32
    %c0_i32_0 = arith.constant 0 : i32
    %c0_i32_1 = arith.constant 0 : i32
    return %c0_i32, %c0_i32_0 : i32, i32
  }
  func.func @transform_4(%arg0: i32) -> (i32, i32) {
    %c0_i32 = arith.constant 0 : i32
    %c0_i32_0 = arith.constant 0 : i32
    %c0_i32_1 = arith.constant 0 : i32
    return %c0_i32, %c0_i32_0 : i32, i32
  }
  func.func @transform_5(%arg0: i32) -> (i32, i32) {
    %c0_i32 = arith.constant 0 : i32
    %c0_i32_0 = arith.constant 0 : i32
    %c0_i32_1 = arith.constant 0 : i32
    return %c0_i32, %c0_i32_0 : i32, i32
  }
}

</mosaic_0001>

<bundles_post_ra>
// kernel: tpu_custom_call.1
= control target key start
LH: loop header
LB: loop body
LE: loop exit
PB: predicated region body
PF: predicated region fallthrough
CT: control target
= control target key end

     0   :  { %10 = vsyncpa [#allocation3], 0  ;;  %s2203_s0 = inlined_call_operand.vmem [shape: s32[16,1], index: 0, kind: input, shape index: {}]   ;;  %s2204_s1 = inlined_call_operand.vmem [shape: f32[56,32], index: 1, kind: input, shape index: {}]   ;;  %s2205_s2 = inlined_call_operand.vmem [shape: f32[2,32], index: 2, kind: input, shape index: {}]   ;;  %s2206_s3 = inlined_call_operand.hbm [shape: f32[32,896], index: 3, kind: input, shape index: {}]   ;;  %s2207_s4 = inlined_call_operand.vmem [shape: f32[1,1664], index: 4, kind: input, shape index: {}]   ;;  %s2208_s5 = inlined_call_operand.hbm [shape: f32[2,256], index: 5, kind: output, shape index: {}]  }
   0x1   :  { %11 = vsyncpa [#allocation4], 0  ;;  %s1952_s18 = smov [#allocation2]  }
   0x2   :  { %s23_s19 = sshll.u32 %s1952_s18, 4  ;;  %s24_s19 = int_to_ptr.vmem [resolvable:$true] %s23_s19 }
   0x3   :  { %s1916_s20 = scalar_lea.vmem %s24_s19, 3584  ;;  %p1921_p1 = scmp.lt.s32.totalorder %s24_s19, %s24_s19 }
   0x4   :  { %p1917_p0 = scmp.ne.s32.totalorder %s24_s19, %s1916_s20  ;;  %p1922_p2 = scmp.lt.s32.totalorder %s1916_s20, %s1916_s20 }
   0x6   :  { %p1923_p3 = por %p1922_p2, %p1921_p1 }
   0x8   :  { %p1924_p4 = pnand %p1923_p3, %p1917_p0 }
   0xa   :  { %1927 = shalt.err (!%p1924_p4)
}
   0xb   :  { %s1953_s21 = smov 896   ;;  %s1954_s22 = smov 56  }
   0xc   :  { %29 = dma.hbm_to_vmem [thread:$0]  %s2206_s3, 3584, %s24_s19, [#allocation3], %s1953_s21, %s1953_s21, %s1954_s22  }
   0xd   :  { %1948 = dma.done.wait [#allocation3], 3584  }
   0xe   :  { %1949 = vsyncadd [#allocation3], 4294963712  ;;  %v1955_v0 = vmov 0   ;;  %v75_v1 = vld [vmem:[%s2203_s0] sm:$0xff]  ;;  %v97_v2 = vld [vmem:[%s2204_s1 + $0x30] sm:$0xff]  ;;  %v1956_v11 = vmov 0.0   ;;  %v77_v12 = vlaneseq }
   0xf   :  { %1871 = vset.pattern.permute.xlu0 %v1955_v0  ;;  %1744 = vmatprep.subr.mxu0 %v97_v2  ;;  %v96_v3 = vld [vmem:[%s2204_s1 + $0x28] sm:$0xff]  ;;  %v95_v5 = vld [vmem:[%s2204_s1 + $0x20] sm:$0xff]  ;;  %v94_v7 = vld [vmem:[%s2204_s1 + $0x18] sm:$0xff]  ;;  %vm98_vm0 = vcmask 457728   ;;  %v1957_v21 = vmov 1966171168  }
  0x10   :  { %80 = vperm.xlu0 %1871, %v75_v1   ;;  %v76_v4 = vld [vmem:[%s2203_s0 + $0x8] sm:$0xff]  ;;  %1745 = vmatpush3.msra.mxu0 %v97_v2  ;;  %v93_v8 = vld [vmem:[%s2204_s1 + $0x10] sm:$0xff]  ;;  %v91_v10 = vld [vmem:[%s2204_s1] sm:$0xff]  ;;  %v78_v13 = vand.u32 127, %v77_v12  ;;  %v191_v22 = vunpack.c.l.s4 %v1957_v21  ;;  %v2031_v23 = vshrl.u32 %v77_v12, 7  ;;  %vm222_vm3 = vcmask 261120  }
  0x11   :  { %1746 = vmatprep.subr.mxu0 %v96_v3  ;;  %v38_v6 = vld [vmem:[#allocation2 + $0xa8] sm:$0xff]  ;;  %v37_v18 = vld [vmem:[#allocation2 + $0x70] sm:$0xff]  ;;  %v36_v19 = vld [vmem:[#allocation2 + $0x38] sm:$0xff]  ;;  %vm1958_vm4 = vmmov 0   ;;  %s1959_s18 = smov 96   ;;  %vm307_vm5 = vcmask 130048  }
  0x12   :  { %1747 = vmatpush3.msra.mxu0 %v96_v3  ;;  %1761 = vmatprep.subr.mxu1 %v38_v6  ;;  %v92_v9 = vld [vmem:[%s2204_s1 + $0x8] sm:$0xff]  ;;  %v35_v20 = vld [vmem:[#allocation2] sm:$0xff]  ;;  %v192_v24 = vunpack.c.0.s8 %v191_v22  ;;  %v2038_v30 = vsub.s32 0, %v2031_v23  ;;  %vm461_vm6 = vcmask 64512   ;;  %s1960_s19 = smov 64   ;;  %s1961_s20 = smov 80  }
  0x13   :  { %1748 = vmatprep.subr.mxu0 %v95_v5  ;;  %1762 = vmatpush3.msra.mxu1 %v38_v6  ;;  %v1651_v25 = vld.sshfl [vmem:[%s2205_s2] sm:$0x11 pattern:$0x75316420]  ;;  %s1962_s21 = smov 112   ;;  %s1963_s22 = smov 48  }
  0x14   :  { %83 = vperm.xlu0 %1871, %v76_v4   ;;  %1749 = vmatpush3.msra.mxu0 %v95_v5  ;;  %v189_v26 = vcombine.high %v1651_v25, %v1651_v25  ;;  %v195_v27 = vsub.s32 %v192_v24, %v2031_v23  ;;  %v1652_v38 = vld [vmem:[%s2207_s4] ss:$0 sm:$0xff]  ;;  %s1964_s23 = smov 16   ;;  %vm1257_vm7 = vcmask 523264   ;;  %vm1420_vm10 = vcmask 1041409   ;;  %s1966_s17 = smov [#allocation5]  }
  0x15   :  { %1750 = vmatprep.subr.mxu0 %v94_v7  ;;  %1763 = vmatprep.subr.mxu1 %v37_v18 }
  0x16   :  { %1751 = vmatpush3.msra.mxu0 %v94_v7  ;;  %1764 = vmatpush3.msra.mxu1 %v37_v18  ;;  %v196_v28 = vrot.slane %v1651_v25, %v195_v27  ;;  %v203_v29 = vrot.slane %v189_v26, %v195_v27 }
  0x17   :  { %1752 = vmatprep.subr.mxu0 %v93_v8  ;;  %1765 = vmatprep.subr.mxu1 %v36_v19 }
  0x18   :  { %1753 = vmatpush3.msra.mxu0 %v93_v8  ;;  %1766 = vmatpush3.msra.mxu1 %v36_v19  ;;  %v207_v31 = vrot.slane %v196_v28, %v2038_v30  ;;  %v211_v33 = vrot.slane %v203_v29, %v2038_v30 }
  0x19   :  { %1754 = vmatprep.subr.mxu0 %v92_v9  ;;  %1767 = vmatprep.subr.mxu1 %v35_v20 }
  0x1a   :  { %1755 = vmatpush3.msra.mxu0 %v92_v9  ;;  %1768 = vmatpush3.msra.mxu1 %v35_v20 }
  0x1b   :  { %1756 = vmatprep.subr.mxu0 %v91_v10  ;;  %1772 = vmatprep.subr.mxu1 %v1956_v11 }
  0x1c   :  { %1757 = vmatpush3.msra.mxu0 %v91_v10 }
  0x1d   :  { %1782 = vmatprep.subr.mxu0 %v1956_v11 }
  0x8b   :  { %v81_v14 = vpop.permute.xlu0 %80 }
  0x8c   :  { %vm85_vm1 = vcmp.eq.s32.totalorder %v78_v13, %v81_v14 }
  0x8d   :  { %v1647_v15 = vsel %vm85_vm1, 1.0, %v1956_v11 }
  0x8e   :  { %1758 = vmatprep.mubr.msk.f32.mxu0 %vm98_vm0, %v1647_v15 }
  0x8f   :  { %v84_v16 = vpop.permute.xlu0 %83 }
  0x90   :  { %vm86_vm2 = vcmp.eq.s32.totalorder %v78_v13, %v84_v16 }
  0x91   :  { %v1648_v17 = vsel %vm86_vm2, 1.0, %v1956_v11 }
  0x92   :  { %1759 = vmatmul.mubr.msk.f32.vlgmr.msra.gmra.mxu0 %vm98_vm0, %v1648_v17 }
  0x93   :  { %1784 = vmatprep.mubr.msk.f32.mxu0 %vm1958_vm4, %v1956_v11 }
 0x152   :  { %v1760_v32 = vpop.f32.mrf.mxu0 }
 0x153   :  { %v2044_v36 = vadd.f32 %v1760_v32, %v211_v33 }
 0x154   :  { %v171_v34 = vpop.f32.mrf.mxu0 }
 0x155   :  { %v2042_v35 = vadd.f32 %v207_v31, %v171_v34 }
 0x157   :  { %1769 = vmatprep.mubr.msk.f32.mxu1 %vm222_vm3, %v2042_v35 }
 0x158   :  { %1770 = vmatmul.mubr.msk.f32.vlgmr.msra.gmra.mxu1 %vm222_vm3, %v2044_v36 }
 0x159   :  { %1774 = vmatprep.mubr.msk.f32.mxu1 %vm1958_vm4, %v1956_v11 }
 0x218   :  { %v1771_v37 = vpop.f32.mrf.mxu1 }
 0x219   :  { %v2060_v41 = vadd.f32 %v1771_v37, %v1652_v38 }
 0x21a   :  { %v295_v39 = vpop.f32.mrf.mxu1 }
 0x21b   :  { %v2057_v40 = vadd.f32 %v1652_v38, %v295_v39 }
 0x21d   :  { %305 = vrot.lane.b32.xlu1 %v2057_v40, %s1959_s18 }
 0x221   :  { %383 = vrot.lane.b32.xlu1 %v2060_v41, %s1959_s18  ;;  %s1638_s18 = sshll.u32 %s1966_s17, 4  ;;  %s1639_s18 = int_to_ptr.vmem [resolvable:$true] %s1638_s18 }
 0x222   :  { %p1933_p6 = scmp.lt.s32.totalorder %s1639_s18, %s1639_s18 }
 0x28f   :  { %v306_v42 = vpop.permute.xlu1 %305 }
 0x290   :  { %1773 = vmatpush3.xpose.msk.msra.mxu1 %vm307_vm5, %v306_v42 }
 0x291   :  { %1777 = vmatprep.subr.mxu1 %v1956_v11 }
 0x293   :  { %1775 = vmatmul.mubr.msk.f32.vlgmr.msra.gmra.mxu1 %vm307_vm5, %v2057_v40  ;;  %v384_v43 = vpop.permute.xlu1 %383 }
 0x294   :  { %1778 = vmatpush3.xpose.msk.msra.mxu1 %vm307_vm5, %v384_v43  ;;  %1779 = vmatprep.mubr.msk.f32.mxu1 %vm1958_vm4, %v1956_v11 }
 0x295   :  { %1787 = vmatprep.subr.mxu1 %v1956_v11 }
 0x297   :  { %1780 = vmatmul.mubr.msk.f32.vlgmr.msra.gmra.mxu1 %vm307_vm5, %v2060_v41 }
 0x298   :  { %1789 = vmatprep.mubr.msk.f32.mxu1 %vm1958_vm4, %v1956_v11 }
 0x353   :  { %v378_v44 = vpop.f32.mrf.mxu1 }
 0x354   :  { %v459_v45 = vmul.f32 0.25, %v378_v44 }
 0x355   :  { %v1776_v46 = vpop.f32.mrf.mxu1 }
 0x356   :  { %v462_v47 = vsel %vm461_vm6, %v459_v45, -inf  ;;  %v42_v46 = vld [vmem:[#allocation2 + $0xb0] sm:$0xff] }
 0x357   :  { %463 = vmax.xlane.f32.xlu0 %v462_v47  ;;  %v455_v48 = vpop.f32.mrf.mxu1  ;;  %v41_v47 = vld [vmem:[#allocation2 + $0x78] sm:$0xff] }
 0x358   :  { %v460_v49 = vmul.f32 0.25, %v455_v48  ;;  %v39_v48 = vld [vmem:[#allocation2 + $0x8] sm:$0xff] }
 0x359   :  { %v1781_v50 = vpop.f32.mrf.mxu1 }
 0x35a   :  { %v465_v51 = vsel %vm461_vm6, %v460_v49, -inf }
 0x35b   :  { %466 = vmax.xlane.f32.xlu1 %v465_v51 }
 0x36c   :  { %484 = vrot.lane.b32.xlu1 %v2057_v40, %s1960_s19 }
 0x36d   :  { %560 = vrot.lane.b32.xlu0 %v2060_v41, %s1960_s19  ;;  %s1928_s19 = scalar_lea.vmem %s1639_s18, 64 }
 0x36e   :  { %p1929_p5 = scmp.ne.s32.totalorder %s1639_s18, %s1928_s19  ;;  %p1934_p7 = scmp.lt.s32.totalorder %s1928_s19, %s1928_s19 }
 0x370   :  { %638 = vrot.lane.b32.xlu1 %v2057_v40, %s1961_s20  ;;  %p1935_p8 = por %p1934_p7, %p1933_p6 }
 0x372   :  { %p1936_p9 = pnand %p1935_p8, %p1929_p5 }
 0x374   :  { %716 = vrot.lane.b32.xlu1 %v2060_v41, %s1961_s20 }
 0x378   :  { %714 = vrot.lane.b32.xlu1 %v2060_v41, %s1962_s21 }
 0x3e0   :  { %v464_v52 = vpop.xlane.xlu0 %463 }
 0x3e1   :  { %v468_v53 = vsub.f32 %v459_v45, %v464_v52 }
 0x3e3   :  { %v470_v54 = vmul.f32 1.442695, %v468_v53 }
 0x3e4   :  { %v561_v55 = vpop.permute.xlu0 %560  ;;  %v467_v56 = vpop.xlane.xlu1 %466 }
 0x3e5   :  { %1872 = vpow2.f32 %v470_v54  ;;  %v469_v57 = vsub.f32 %v460_v49, %v467_v56  ;;  %1788 = vmatpush3.msra.mxu1 %v561_v55 }
 0x3e6   :  { %1797 = vmatprep.subr.mxu1 %v1956_v11 }
 0x3e7   :  { %v472_v58 = vmul.f32 1.442695, %v469_v57  ;;  %v1667_v57 = vld [vmem:[%s2207_s4 + $0x1] ss:$0 sm:$0xff] }
 0x3e8   :  { %v485_v59 = vpop.permute.xlu1 %484 }
 0x3e9   :  { %1874 = vpow2.f32 %v472_v58  ;;  %1783 = vmatpush3.msra.mxu0 %v485_v59 }
 0x3ea   :  { %1792 = vmatprep.subr.mxu0 %v1956_v11 }
 0x3ec   :  { %v639_v2 = vpop.permute.xlu1 %638 }
 0x3f0   :  { %v717_v6 = vpop.permute.xlu1 %716 }
 0x3f2   :  { %v1873_v60 = vpop.eup %1872 }
 0x3f3   :  { %v474_v61 = vsel %vm461_vm6, %v1873_v60, 0.0 }
 0x3f4   :  { %475 = vadd.xlane.f32.xlu0 %v474_v61  ;;  %v715_v9 = vpop.permute.xlu1 %714 }
 0x3f6   :  { %v1875_v62 = vpop.eup %1874 }
 0x3f7   :  { %v477_v63 = vsel %vm461_vm6, %v1875_v62, 0.0 }
 0x3f8   :  { %478 = vadd.xlane.f32.xlu0 %v477_v63 }
 0x40e   :  { %636 = vrot.lane.b32.xlu0 %v2057_v40, %s1962_s21 }
 0x47d   :  { %v476_v0 = vpop.xlane.xlu0 %475 }
 0x47e   :  { %1876 = vrcp.f32 %v476_v0 }
 0x481   :  { %v479_v1 = vpop.xlane.xlu0 %478 }
 0x482   :  { %1878 = vrcp.f32 %v479_v1 }
 0x485   :  { %v637_v8 = vpop.permute.xlu0 %636 }
 0x48b   :  { %v1877_v3 = vpop.eup %1876 }
 0x48c   :  { %v482_v4 = vmul.f32 %v1877_v3, %v1873_v60 }
 0x48e   :  { %1785 = vmatmul.mubr.msk.f32.vlgmr.msra.gmra.mxu0 %vm461_vm6, %v482_v4 }
 0x48f   :  { %v1879_v5 = vpop.eup %1878  ;;  %1793 = vmatpush3.xpose.msk.msra.mxu0 %vm307_vm5, %v639_v2  ;;  %1794 = vmatprep.mubr.msk.f32.mxu0 %vm1958_vm4, %v1956_v11 }
 0x490   :  { %v483_v7 = vmul.f32 %v1879_v5, %v1875_v62  ;;  %1802 = vmatprep.subr.mxu0 %v1956_v11 }
 0x492   :  { %1790 = vmatmul.mubr.msk.f32.vlgmr.msra.gmra.mxu1 %vm461_vm6, %v483_v7  ;;  %1795 = vmatmul.mubr.msk.f32.vlgmr.msra.gmra.mxu0 %vm307_vm5, %v637_v8 }
 0x493   :  { %1798 = vmatpush3.xpose.msk.msra.mxu1 %vm307_vm5, %v717_v6  ;;  %1799 = vmatprep.mubr.msk.f32.mxu1 %vm1958_vm4, %v1956_v11 }
 0x494   :  { %1807 = vmatprep.subr.mxu1 %v1956_v11  ;;  %1804 = vmatprep.mubr.msk.f32.mxu0 %vm1958_vm4, %v1956_v11 }
 0x496   :  { %1800 = vmatmul.mubr.msk.f32.vlgmr.msra.gmra.mxu1 %vm307_vm5, %v715_v9 }
 0x497   :  { %1809 = vmatprep.mubr.msk.f32.mxu1 %vm1958_vm4, %v1956_v11 }
 0x54e   :  { %v2103_v10 = vpop.f32.mrf.mxu0 }
 0x550   :  { %v1786_v12 = vpop.f32.mrf.mxu0 }
 0x551   :  { %v46_v12 = vld [vmem:[#allocation2 + $0xb8] sm:$0xff] }
 0x552   :  { %v2105_v13 = vpop.f32.mrf.mxu1  ;;  %v710_v14 = vpop.f32.mrf.mxu0 }
 0x553   :  { %v792_v15 = vmul.f32 0.25, %v710_v14  ;;  %v43_v14 = vld [vmem:[#allocation2 + $0x10] sm:$0xff] }
 0x554   :  { %v1791_v16 = vpop.f32.mrf.mxu1  ;;  %v1796_v17 = vpop.f32.mrf.mxu0 }
 0x555   :  { %v794_v18 = vsel %vm461_vm6, %v792_v15, -inf }
 0x556   :  { %795 = vmax.xlane.f32.xlu0 %v794_v18  ;;  %v788_v19 = vpop.f32.mrf.mxu1 }
 0x557   :  { %v793_v20 = vmul.f32 0.25, %v788_v19 }
 0x558   :  { %v1801_v21 = vpop.f32.mrf.mxu1 }
 0x559   :  { %v797_v22 = vsel %vm461_vm6, %v793_v20, -inf }
 0x55a   :  { %798 = vmax.xlane.f32.xlu1 %v797_v22  ;;  %v1670_v22 = vld [vmem:[%s2207_s4 + $0x4] ss:$0 sm:$0xff] }
 0x56b   :  { %816 = vrot.lane.b32.xlu1 %v2057_v40, %s1963_s22 }
 0x5df   :  { %v796_v24 = vpop.xlane.xlu0 %795 }
 0x5e0   :  { %v800_v25 = vsub.f32 %v792_v15, %v796_v24 }
 0x5e2   :  { %v802_v26 = vmul.f32 1.442695, %v800_v25  ;;  %v1671_v25 = vld [vmem:[%s2207_s4 + $0x5] ss:$0 sm:$0xff] }
 0x5e3   :  { %v799_v27 = vpop.xlane.xlu1 %798 }
 0x5e4   :  { %1880 = vpow2.f32 %v802_v26  ;;  %v801_v28 = vsub.f32 %v793_v20, %v799_v27 }
 0x5e6   :  { %v804_v29 = vmul.f32 1.442695, %v801_v28 }
 0x5e7   :  { %v817_v31 = vpop.permute.xlu1 %816 }
 0x5e8   :  { %1882 = vpow2.f32 %v804_v29  ;;  %1803 = vmatpush3.msra.mxu0 %v817_v31 }
 0x5e9   :  { %1812 = vmatprep.subr.mxu0 %v42_v46 }
 0x5f1   :  { %v1881_v32 = vpop.eup %1880 }
 0x5f2   :  { %v806_v33 = vsel %vm461_vm6, %v1881_v32, 0.0 }
 0x5f3   :  { %807 = vadd.xlane.f32.xlu0 %v806_v33  ;;  %v50_v33 = vld [vmem:[#allocation2 + $0xc0] sm:$0xff] }
 0x5f5   :  { %v1883_v34 = vpop.eup %1882 }
 0x5f6   :  { %v809_v37 = vsel %vm461_vm6, %v1883_v34, 0.0 }
 0x5f7   :  { %810 = vadd.xlane.f32.xlu0 %v809_v37  ;;  %v48_v37 = vld [vmem:[#allocation2 + $0x50] sm:$0xff] }
 0x60d   :  { %892 = vrot.lane.b32.xlu0 %v2060_v41, %s1963_s22  ;;  %v40_v41 = vld [vmem:[#allocation2 + $0x40] sm:$0xff] }
 0x67c   :  { %v808_v38 = vpop.xlane.xlu0 %807 }
 0x67d   :  { %1884 = vrcp.f32 %v808_v38  ;;  %v47_v38 = vld [vmem:[#allocation2 + $0x18] sm:$0xff] }
 0x680   :  { %v811_v39 = vpop.xlane.xlu0 %810 }
 0x681   :  { %1886 = vrcp.f32 %v811_v39  ;;  %v1672_v39 = vld [vmem:[%s2207_s4 + $0x2] ss:$0 sm:$0xff] }
 0x684   :  { %v893_v40 = vpop.permute.xlu0 %892 }
 0x685   :  { %1808 = vmatpush3.msra.mxu1 %v893_v40 }
 0x686   :  { %1823 = vmatprep.subr.mxu1 %v46_v12 }
 0x68a   :  { %v1885_v42 = vpop.eup %1884 }
 0x68b   :  { %v814_v43 = vmul.f32 %v1885_v42, %v1881_v32 }
 0x68d   :  { %1805 = vmatmul.mubr.msk.f32.vlgmr.msra.gmra.mxu0 %vm461_vm6, %v814_v43 }
 0x68e   :  { %v1887_v44 = vpop.eup %1886  ;;  %1813 = vmatpush3.msra.mxu0 %v42_v46 }
 0x68f   :  { %v815_v45 = vmul.f32 %v1887_v44, %v1883_v34  ;;  %1814 = vmatprep.subr.mxu0 %v41_v47  ;;  %v49_v34 = vld [vmem:[#allocation2 + $0x88] sm:$0xff] }
 0x690   :  { %1815 = vmatpush3.msra.mxu0 %v41_v47 }
 0x691   :  { %1810 = vmatmul.mubr.msk.f32.vlgmr.msra.gmra.mxu1 %vm461_vm6, %v815_v45  ;;  %1816 = vmatprep.subr.mxu0 %v40_v41 }
 0x692   :  { %1817 = vmatpush3.msra.mxu0 %v40_v41  ;;  %1824 = vmatpush3.msra.mxu1 %v46_v12 }
 0x693   :  { %1818 = vmatprep.subr.mxu0 %v39_v48 }
 0x694   :  { %1819 = vmatpush3.msra.mxu0 %v39_v48 }
 0x695   :  { %1834 = vmatprep.subr.msk.mxu0 %vm1257_vm7, %v50_v33 }
 0x74d   :  { %v888_v49 = vpop.f32.mrf.mxu0 }
 0x74e   :  { %970 = vrot.lane.b32.xlu1 %v888_v49, %s1964_s23 }
 0x74f   :  { %v1806_v50 = vpop.f32.mrf.mxu0 }
 0x751   :  { %v964_v51 = vpop.f32.mrf.mxu1 }
 0x752   :  { %972 = vrot.lane.b32.xlu1 %v964_v51, %s1964_s23 }
 0x753   :  { %v1811_v52 = vpop.f32.mrf.mxu1 }
 0x7c0   :  { %v971_v53 = vpop.permute.xlu1 %970 }
 0x7c1   :  { %v976_v54 = vsel %vm307_vm5, %v2103_v10, %v971_v53 }
 0x7c2   :  { %1820 = vmatprep.mubr.msk.f32.mxu0 %vm222_vm3, %v976_v54 }
 0x7c4   :  { %v973_v55 = vpop.permute.xlu1 %972 }
 0x7c5   :  { %v977_v56 = vsel %vm307_vm5, %v2105_v13, %v973_v55  ;;  %v44_v13 = vld [vmem:[#allocation2 + $0x48] sm:$0xff] }
 0x7c6   :  { %1821 = vmatmul.mubr.msk.f32.vlgmr.msra.gmra.mxu0 %vm222_vm3, %v977_v56 }
 0x7c7   :  { %1835 = vmatpush3.xpose.msk.msra.mxu0 %vm1257_vm7, %v50_v33 }
 0x7c8   :  { %1836 = vmatprep.subr.msk.mxu0 %vm1257_vm7, %v49_v34 }
 0x7cb   :  { %1837 = vmatpush3.xpose.msk.msra.mxu0 %vm1257_vm7, %v49_v34  ;;  %v1675_v34 = vld [vmem:[%s2207_s4 + $0x3] ss:$0 sm:$0xff] }
 0x7cc   :  { %1838 = vmatprep.subr.msk.mxu0 %vm1257_vm7, %v48_v37 }
 0x7cf   :  { %1839 = vmatpush3.xpose.msk.msra.mxu0 %vm1257_vm7, %v48_v37 }
 0x7d0   :  { %1840 = vmatprep.subr.msk.mxu0 %vm1257_vm7, %v47_v38 }
 0x7d3   :  { %1841 = vmatpush3.xpose.msk.msra.mxu0 %vm1257_vm7, %v47_v38 }
 0x886   :  { %v1822_v58 = vpop.f32.mrf.mxu0 }
 0x887   :  { %v1062_v59 = vadd.f32 %v1822_v58, %v1667_v57 }
 0x888   :  { %v1056_v60 = vpop.f32.mrf.mxu0 }
 0x889   :  { %v1057_v61 = vadd.f32 %v1667_v57, %v1056_v60  ;;  %v1066_v62 = vadd.f32 %v1062_v59, %v2044_v36 }
 0x88b   :  { %v1070_v63 = vsel %vm222_vm3, %v1066_v62, 0.0  ;;  %v1065_v0 = vadd.f32 %v1057_v61, %v2042_v35  ;;  %v45_v35 = vld [vmem:[#allocation2 + $0x80] sm:$0xff] }
 0x88c   :  { %1071 = vadd.xlane.f32.xlu1 %v1070_v63  ;;  %1825 = vmatprep.subr.mxu1 %v45_v35 }
 0x88d   :  { %v1067_v1 = vsel %vm222_vm3, %v1065_v0, 0.0  ;;  %1826 = vmatpush3.msra.mxu1 %v45_v35 }
 0x88e   :  { %1068 = vadd.xlane.f32.xlu0 %v1067_v1  ;;  %1827 = vmatprep.subr.mxu1 %v44_v13 }
 0x88f   :  { %1828 = vmatpush3.msra.mxu1 %v44_v13 }
 0x890   :  { %1829 = vmatprep.subr.mxu1 %v43_v14 }
 0x891   :  { %1830 = vmatpush3.msra.mxu1 %v43_v14 }
 0x892   :  { %1845 = vmatprep.subr.mxu1 %v1956_v11 }
 0x915   :  { %v1072_v2 = vpop.xlane.xlu1 %1071 }
 0x916   :  { %v1075_v3 = vmul.f32 0.03125, %v1072_v2 }
 0x917   :  { %v1069_v4 = vpop.xlane.xlu0 %1068 }
 0x918   :  { %v1074_v5 = vmul.f32 0.03125, %v1069_v4  ;;  %v1077_v6 = vsub.f32 %v1066_v62, %v1075_v3 }
 0x91a   :  { %v1076_v7 = vsub.f32 %v1065_v0, %v1074_v5  ;;  %v1079_v10 = vmul.f32 %v1077_v6, %v1077_v6 }
 0x91c   :  { %v1078_v8 = vmul.f32 %v1076_v7, %v1076_v7  ;;  %v1083_v36 = vsel %vm222_vm3, %v1079_v10, 0.0 }
 0x91e   :  { %v1080_v9 = vsel %vm222_vm3, %v1078_v8, 0.0 }
 0x91f   :  { %1081 = vadd.xlane.f32.xlu0 %v1080_v9 }
 0x923   :  { %1084 = vadd.xlane.f32.xlu0 %v1083_v36 }
 0x9a8   :  { %v1082_v15 = vpop.xlane.xlu0 %1081 }
 0x9a9   :  { %v1086_v16 = vmul.f32 0.03125, %v1082_v15 }
 0x9ab   :  { %v1088_v17 = vadd.f32 1e-05, %v1086_v16 }
 0x9ac   :  { %v1085_v18 = vpop.xlane.xlu0 %1084 }
 0x9ad   :  { %1888 = vrsqrt.f32 %v1088_v17  ;;  %v1087_v19 = vmul.f32 0.03125, %v1085_v18  ;;  %v1965_v17 = vmov -1.0  }
 0x9af   :  { %v1089_v20 = vadd.f32 1e-05, %v1087_v19 }
 0x9b1   :  { %1890 = vrsqrt.f32 %v1089_v20 }
 0x9ba   :  { %v1889_v21 = vpop.eup %1888 }
 0x9bb   :  { %v1092_v24 = vmul.f32 %v1889_v21, %v1076_v7 }
 0x9bd   :  { %v1100_v26 = vmul.f32 %v1670_v22, %v1092_v24 }
 0x9be   :  { %v1891_v27 = vpop.eup %1890 }
 0x9bf   :  { %v1093_v28 = vmul.f32 %v1891_v27, %v1077_v6  ;;  %v2137_v29 = vadd.f32 %v1671_v25, %v1100_v26 }
 0x9c1   :  { %v1101_v31 = vmul.f32 %v1670_v22, %v1093_v28  ;;  %1831 = vmatprep.mubr.msk.f32.mxu1 %vm222_vm3, %v2137_v29 }
 0x9c3   :  { %v2141_v32 = vadd.f32 %v1671_v25, %v1101_v31 }
 0x9c5   :  { %1832 = vmatmul.mubr.msk.f32.vlgmr.msra.gmra.mxu1 %vm222_vm3, %v2141_v32 }
 0x9c6   :  { %1853 = vmatprep.mubr.msk.f32.mxu1 %vm1958_vm4, %v1956_v11 }
 0xa85   :  { %v1833_v40 = vpop.f32.mrf.mxu1 }
 0xa86   :  { %v1194_v42 = vadd.f32 %v1833_v40, %v1672_v39 }
 0xa87   :  { %v1188_v43 = vpop.f32.mrf.mxu1 }
 0xa88   :  { %v1200_v44 = vmul.f32 0.70710677, %v1194_v42  ;;  %v1189_v45 = vadd.f32 %v1672_v39, %v1188_v43  ;;  %v1198_v28 = vmul.f32 0.5, %v1194_v42 }
 0xa8a   :  { %v1206_v46 = vand.u32 2147483647, %v1200_v44  ;;  %v1199_v47 = vmul.f32 0.70710677, %v1189_v45  ;;  %vm1202_vm8 = vcmp.ge.f32.partialorder %v1200_v44, 0.0  ;;  %v1197_v26 = vmul.f32 0.5, %v1189_v45 }
 0xa8b   :  { %v1204_v18 = vsel %vm1202_vm8, 1.0, %v1965_v17 }
 0xa8c   :  { %v1208_v41 = vmul.f32 0.3275911, %v1206_v46  ;;  %v1205_v48 = vand.u32 2147483647, %v1199_v47  ;;  %v1234_v52 = vsub.f32 0.0, %v1206_v46  ;;  %vm1201_vm9 = vcmp.ge.f32.partialorder %v1199_v47, 0.0 }
 0xa8d   :  { %v1203_v22 = vsel %vm1201_vm9, 1.0, %v1965_v17 }
 0xa8e   :  { %v1210_v49 = vadd.f32 1.0, %v1208_v41  ;;  %v1207_v50 = vmul.f32 0.3275911, %v1205_v48  ;;  %v1233_v53 = vsub.f32 0.0, %v1205_v48  ;;  %v1236_v54 = vmul.f32 %v1234_v52, %v1206_v46 }
 0xa90   :  { %1892 = vrcp.f32 %v1210_v49  ;;  %v1209_v51 = vadd.f32 1.0, %v1207_v50  ;;  %v1235_v56 = vmul.f32 %v1233_v53, %v1205_v48  ;;  %v1239_v58 = vmul.f32 1.442695, %v1236_v54  ;;  %v54_v54 = vld [vmem:[#allocation2 + $0xc8] sm:$0xff] }
 0xa91   :  { %1846 = vmatpush3.msra.mxu1 %v54_v54 }
 0xa92   :  { %1894 = vrcp.f32 %v1209_v51  ;;  %v1237_v62 = vmul.f32 1.442695, %v1235_v56  ;;  %1847 = vmatprep.subr.mxu1 %v1956_v11  ;;  %v51_v56 = vld [vmem:[#allocation2 + $0x20] sm:$0xff] }
 0xa93   :  { %1896 = vpow2.f32 %v1239_v58 }
 0xa94   :  { %1898 = vpow2.f32 %v1237_v62 }
 0xa9d   :  { %v1893_v55 = vpop.eup %1892 }
 0xa9e   :  { %v1216_v57 = vmul.f32 1.0614054, %v1893_v55 }
 0xa9f   :  { %v1895_v59 = vpop.eup %1894 }
 0xaa0   :  { %v1218_v60 = vadd.f32 -1.4531521, %v1216_v57  ;;  %v1215_v61 = vmul.f32 1.0614054, %v1895_v59  ;;  %v1897_v12 = vpop.eup %1896 }
 0xaa1   :  { %v1899_v15 = vpop.eup %1898 }
 0xaa2   :  { %v1220_v63 = vmul.f32 %v1893_v55, %v1218_v60  ;;  %v1217_v0 = vadd.f32 -1.4531521, %v1215_v61 }
 0xaa4   :  { %v1222_v1 = vadd.f32 1.4214138, %v1220_v63  ;;  %v1219_v2 = vmul.f32 %v1895_v59, %v1217_v0  ;;  %v1682_v0 = vld [vmem:[%s2207_s4 + $0x6] ss:$0 sm:$0xff] }
 0xaa6   :  { %v1224_v3 = vmul.f32 %v1893_v55, %v1222_v1  ;;  %v1221_v4 = vadd.f32 1.4214138, %v1219_v2 }
 0xaa8   :  { %v1226_v5 = vadd.f32 -0.28449672, %v1224_v3  ;;  %v1223_v6 = vmul.f32 %v1895_v59, %v1221_v4  ;;  %v1683_v3 = vld [vmem:[%s2207_s4 + $0x7] ss:$0 sm:$0xff] }
 0xaaa   :  { %v1228_v7 = vmul.f32 %v1893_v55, %v1226_v5  ;;  %v1225_v8 = vadd.f32 -0.28449672, %v1223_v6 }
 0xaac   :  { %v1230_v9 = vadd.f32 0.2548296, %v1228_v7  ;;  %v1227_v10 = vmul.f32 %v1895_v59, %v1225_v8 }
 0xaae   :  { %v1232_v36 = vmul.f32 %v1893_v55, %v1230_v9  ;;  %v1229_v35 = vadd.f32 0.2548296, %v1227_v10  ;;  %v52_v55 = vld [vmem:[#allocation2 + $0x58] sm:$0xff] }
 0xab0   :  { %v1242_v13 = vmul.f32 %v1897_v12, %v1232_v36  ;;  %v1231_v14 = vmul.f32 %v1895_v59, %v1229_v35 }
 0xab2   :  { %v1244_v16 = vsub.f32 1.0, %v1242_v13  ;;  %v1241_v19 = vmul.f32 %v1899_v15, %v1231_v14 }
 0xab4   :  { %v1246_v20 = vmul.f32 %v1244_v16, %v1204_v18  ;;  %v1243_v21 = vsub.f32 1.0, %v1241_v19 }
 0xab6   :  { %v1245_v24 = vmul.f32 %v1243_v21, %v1203_v22  ;;  %v1248_v25 = vadd.f32 1.0, %v1246_v20 }
 0xab8   :  { %v1247_v27 = vadd.f32 1.0, %v1245_v24  ;;  %v1250_v33 = vmul.f32 %v1248_v25, %v1198_v28  ;;  %v61_v28 = vld [vmem:[#allocation2 + $0xd0] sm:$0xff] }
 0xaba   :  { %v1249_v31 = vmul.f32 %v1247_v27, %v1197_v26  ;;  %v62_v27 = vld [vmem:[#allocation2 + $0xd8] sm:$0xff] }
 0xabc   :  { %1842 = vmatprep.mubr.msk.f32.mxu0 %vm1257_vm7, %v1249_v31  ;;  %v60_v31 = vld [vmem:[#allocation2 + $0xa0] sm:$0xff] }
 0xabd   :  { %1843 = vmatmul.mubr.msk.f32.vlgmr.msra.gmra.mxu0 %vm1257_vm7, %v1250_v33  ;;  %v59_v33 = vld [vmem:[#allocation2 + $0x98] sm:$0xff] }
 0xb7d   :  { %v1844_v37 = vpop.f32.mrf.mxu0 }
 0xb7e   :  { %v1348_v38 = vadd.f32 %v1844_v37, %v1675_v34  ;;  %v57_v37 = vld [vmem:[#allocation2 + $0x60] sm:$0xff] }
 0xb7f   :  { %v1342_v39 = vpop.f32.mrf.mxu0 }
 0xb80   :  { %v1343_v40 = vadd.f32 %v1675_v34, %v1342_v39  ;;  %v1352_v43 = vadd.f32 %v1348_v38, %v2141_v32  ;;  %v58_v34 = vld [vmem:[#allocation2 + $0x68] sm:$0xff]  ;;  %v56_v38 = vld [vmem:[#allocation2 + $0x30] sm:$0xff] }
 0xb81   :  { %v55_v39 = vld [vmem:[#allocation2 + $0x28] sm:$0xff] }
 0xb82   :  { %v1356_v44 = vsel %vm222_vm3, %v1352_v43, 0.0  ;;  %v1351_v42 = vadd.f32 %v1343_v40, %v2137_v29  ;;  %v53_v29 = vld [vmem:[#allocation2 + $0x90] sm:$0xff]  ;;  %v1686_v40 = vld [vmem:[%s2207_s4 + $0x9] ss:$0 sm:$0xff] }
 0xb83   :  { %1357 = vadd.xlane.f32.xlu0 %v1356_v44  ;;  %1848 = vmatpush3.msra.mxu1 %v53_v29 }
 0xb84   :  { %v1353_v45 = vsel %vm222_vm3, %v1351_v42, 0.0  ;;  %1849 = vmatprep.subr.mxu1 %v1956_v11 }
 0xb85   :  { %1354 = vadd.xlane.f32.xlu1 %v1353_v45  ;;  %1850 = vmatpush3.msra.mxu1 %v52_v55 }
 0xb86   :  { %1851 = vmatprep.subr.mxu1 %v1956_v11 }
 0xb87   :  { %1852 = vmatpush3.msra.mxu1 %v51_v56 }
 0xb88   :  { %1573 = vmatprep.subr.mxu1 %v62_v27 }
 0xc0c   :  { %v1358_v46 = vpop.xlane.xlu0 %1357 }
 0xc0d   :  { %v1360_v47 = vmul.f32 0.03125, %v1358_v46 }
 0xc0e   :  { %v1355_v41 = vpop.xlane.xlu1 %1354 }
 0xc0f   :  { %v1362_v48 = vsub.f32 %v1352_v43, %v1360_v47  ;;  %v1359_v49 = vmul.f32 0.03125, %v1355_v41 }
 0xc11   :  { %v1361_v50 = vsub.f32 %v1351_v42, %v1359_v49  ;;  %v1364_v51 = vmul.f32 %v1362_v48, %v1362_v48  ;;  %v1687_v42 = vld [vmem:[%s2207_s4 + $0xa] ss:$0 sm:$0xff] }
 0xc13   :  { %v1368_v52 = vsel %vm222_vm3, %v1364_v51, 0.0  ;;  %v1363_v53 = vmul.f32 %v1361_v50, %v1361_v50 }
 0xc14   :  { %1369 = vadd.xlane.f32.xlu0 %v1368_v52 }
 0xc15   :  { %v1365_v32 = vsel %vm222_vm3, %v1363_v53, 0.0 }
 0xc16   :  { %1366 = vadd.xlane.f32.xlu1 %v1365_v32 }
 0xc9d   :  { %v1370_v57 = vpop.xlane.xlu0 %1369 }
 0xc9e   :  { %v1372_v58 = vmul.f32 0.03125, %v1370_v57 }
 0xc9f   :  { %v1367_v59 = vpop.xlane.xlu1 %1366 }
 0xca0   :  { %v1374_v60 = vadd.f32 1e-05, %v1372_v58  ;;  %v1371_v61 = vmul.f32 0.03125, %v1367_v59 }
 0xca2   :  { %1900 = vrsqrt.f32 %v1374_v60  ;;  %v1373_v62 = vadd.f32 1e-05, %v1371_v61 }
 0xca4   :  { %1902 = vrsqrt.f32 %v1373_v62 }
 0xcaf   :  { %v1901_v63 = vpop.eup %1900 }
 0xcb0   :  { %v1378_v1 = vmul.f32 %v1901_v63, %v1362_v48 }
 0xcb1   :  { %v1903_v2 = vpop.eup %1902 }
 0xcb2   :  { %v1386_v4 = vmul.f32 %v1682_v0, %v1378_v1  ;;  %v1377_v5 = vmul.f32 %v1903_v2, %v1361_v50 }
 0xcb4   :  { %v1385_v6 = vmul.f32 %v1682_v0, %v1377_v5  ;;  %v1394_v7 = vadd.f32 %v1683_v3, %v1386_v4 }
 0xcb6   :  { %v1393_v8 = vadd.f32 %v1683_v3, %v1385_v6  ;;  %v1402_v9 = vsel %vm222_vm3, %v1394_v7, 0.0  ;;  %v1542_v6 = vsub.s32 1, %v2031_v23  ;;  %v74_v7 = vld [vmem:[%s2207_s4 + $0xb] sm:$0x3] }
 0xcb7   :  { %v1403_v10 = vrot.slane %v1402_v9, 4 }
 0xcb8   :  { %v1395_v36 = vsel %vm222_vm3, %v1393_v8, 0.0  ;;  %v1539_v8 = vrot.slane %v74_v7, %v2038_v30 }
 0xcb9   :  { %v1396_v12 = vrot.slane %v1395_v36, 4  ;;  %v1404_v35 = vadd.f32 %v1403_v10, %v1402_v9  ;;  %v1543_v9 = vrot.slane %v74_v7, %v1542_v6 }
 0xcbb   :  { %v1397_v13 = vadd.f32 %v1396_v12, %v1395_v36  ;;  %v1405_v14 = vrot.slane %v1404_v35, 2 }
 0xcbd   :  { %v1398_v15 = vrot.slane %v1397_v13, 2  ;;  %v1406_v16 = vadd.f32 %v1405_v14, %v1404_v35 }
 0xcbf   :  { %v1399_v18 = vadd.f32 %v1398_v15, %v1397_v13  ;;  %v1407_v19 = vrot.slane %v1406_v16, 1 }
 0xcc1   :  { %v1400_v20 = vrot.slane %v1399_v18, 1  ;;  %v1408_v21 = vadd.f32 %v1407_v19, %v1406_v16 }
 0xcc3   :  { %v1401_v22 = vadd.f32 %v1400_v20, %v1399_v18  ;;  %v1411_v25 = vmul.f32 0.125, %v1408_v21 }
 0xcc5   :  { %v1410_v24 = vmul.f32 0.125, %v1401_v22 }
 0xcc7   :  { %v1421_v26 = vsel %vm1420_vm10, %v1411_v25, %v1410_v24 }
 0xcc8   :  { %1854 = vmatmul.mubr.msk.f32.vlgmr.msra.gmra.mxu1 %vm222_vm3, %v1421_v26 }
 0xcc9   :  { %1613 = vmatprep.mubr.f32.mxu1 %v1956_v11  ;;  %1574 = vmatpush1.msra.mxu1 %v61_v28  ;;  %v1684_v11 = vld [vmem:[%s2207_s4 + $0x8] ss:$0 sm:$0xff] }
 0xcca   :  { %1575 = vmatprep.subr.mxu1 %v60_v31 }
 0xccb   :  { %1576 = vmatpush1.msra.mxu1 %v59_v33 }
 0xccc   :  { %1577 = vmatprep.subr.mxu1 %v58_v34 }
 0xccd   :  { %1578 = vmatpush1.msra.mxu1 %v57_v37 }
 0xcce   :  { %1579 = vmatprep.subr.mxu1 %v56_v38 }
 0xccf   :  { %1580 = vmatpush1.msra.mxu1 %v55_v39 }
 0xd88   :  { %v1490_v43 = vpop.f32.mrf.mxu1 }
 0xd89   :  { %v1491_v44 = vadd.f32 %v1684_v11, %v1490_v43 }
 0xd8a   :  { %v1855_v45 = vpop.f32.mrf.mxu1 }
 0xd8b   :  { %v1500_v46 = vmul.f32 %v1686_v40, %v1491_v44 }
 0xd8d   :  { %v1507_v47 = vadd.f32 %v1687_v42, %v1500_v46 }
 0xd8f   :  { %v1509_v41 = vmul.f32 0.70710677, %v1507_v47  ;;  %v1508_v3 = vmul.f32 0.5, %v1507_v47 }
 0xd91   :  { %v1512_v48 = vand.u32 2147483647, %v1509_v41  ;;  %vm1510_vm11 = vcmp.ge.f32.partialorder %v1509_v41, 0.0 }
 0xd92   :  { %v1511_v1 = vsel %vm1510_vm11, 1.0, %v1965_v17 }
 0xd93   :  { %v1513_v49 = vmul.f32 0.3275911, %v1512_v48  ;;  %v1526_v51 = vsub.f32 0.0, %v1512_v48 }
 0xd95   :  { %v1514_v50 = vadd.f32 1.0, %v1513_v49  ;;  %v1527_v52 = vmul.f32 %v1526_v51, %v1512_v48 }
 0xd97   :  { %1904 = vrcp.f32 %v1514_v50  ;;  %v1528_v54 = vmul.f32 1.442695, %v1527_v52 }
 0xd99   :  { %1906 = vpow2.f32 %v1528_v54 }
 0xda4   :  { %v1905_v53 = vpop.eup %1904 }
 0xda5   :  { %v1517_v32 = vmul.f32 1.0614054, %v1905_v53 }
 0xda6   :  { %v1907_v62 = vpop.eup %1906 }
 0xda7   :  { %v1518_v29 = vadd.f32 -1.4531521, %v1517_v32 }
 0xda9   :  { %v1519_v55 = vmul.f32 %v1905_v53, %v1518_v29 }
 0xdab   :  { %v1520_v56 = vadd.f32 1.4214138, %v1519_v55 }
 0xdad   :  { %v1521_v57 = vmul.f32 %v1905_v53, %v1520_v56 }
 0xdaf   :  { %v1522_v58 = vadd.f32 -0.28449672, %v1521_v57 }
 0xdb1   :  { %v1523_v59 = vmul.f32 %v1905_v53, %v1522_v58 }
 0xdb3   :  { %v1524_v60 = vadd.f32 0.2548296, %v1523_v59 }
 0xdb5   :  { %v1525_v61 = vmul.f32 %v1905_v53, %v1524_v60 }
 0xdb7   :  { %v1530_v63 = vmul.f32 %v1907_v62, %v1525_v61 }
 0xdb9   :  { %v1531_v0 = vsub.f32 1.0, %v1530_v63 }
 0xdbb   :  { %v1532_v2 = vmul.f32 %v1531_v0, %v1511_v1 }
 0xdbd   :  { %v1533_v4 = vadd.f32 1.0, %v1532_v2 }
 0xdbf   :  { %v1534_v5 = vmul.f32 %v1533_v4, %v1508_v3 }
 0xdc1   :  { %1688 = vmatmul.mubr.msk.f32.vlgmr.msra.gmra.mxu1 %vm222_vm3, %v1534_v5 }
 0xe81   :  { %v1615_v10 = vpop.f32.mrf.mxu1 }
 0xe82   :  { %v1616_v17 = vadd.f32 %v1615_v10, %v1539_v8 }
 0xe83   :  { %v1617_v36 = vpop.f32.mrf.mxu1 }
 0xe84   :  { %v1618_v12 = vadd.f32 %v1617_v36, %v1543_v9 }
 0xe86   :  { %v1622_v35 = vcombine.low %v1616_v17, %v1618_v12 }
 0xe88   :  { %1689 = vst.sshfl [vmem:[#allocation5] sm:$0x33 pattern:$0x76325410] %v1622_v35 }
 0xe89   :  { %1939 = shalt.err (!%p1936_p9)
}
 0xe8a   :  { %1641 = dma.vmem_to_hbm [thread:$0]  %s1639_s18, 64, %s2208_s5, [#allocation4]  }
 0xe8b   :  { %1950 = dma.done.wait [#allocation4], 64  }
 0xe8c   :  { %1951 = vsyncadd [#allocation4], 4294967232 }
 0xe8d   :  { %1645 = vsyncpa [#allocation3], 1 }
 0xe8e   :  { %1646 = vsyncpa [#allocation4], 1 }

</bundles_post_ra>
